<compile_context>
chip_gen: v6e
topology: v6e:2x2x1
jax: 0.10.0
libtpu: 0.0.40
codegen_flags: <defaults>
</compile_context>

<pallas_src>
import jax
import jax.numpy as jnp
from jax.experimental import pallas as pl
from jax.experimental.pallas import tpu as pltpu


# Row indices inside the packed "vector slab" (each row is 2H lanes wide).
_ROW_W_ATT = 0
_ROW_B_WORD = 1
_ROW_B_POS = 2
_ROW_B_CAU = 3
_ROW_B_MID = 4
_ROW_B_PE = 5
_ROW_B_CE = 6
_ROW_W_RANK_E = 7
_ROW_W_RANK_C = 8
_ROW_B_RANK = 9
_ROW_W_CAU_P0 = 10          # n_class rows of W_cau[2H:, :] follow
_OUT_WIDTH = 128            # lane-dense packed output width


def _make_kernel(D, S, E, two_h, n_class):
    C = n_class
    pad_tail = _OUT_WIDTH - D - 2 * C

    def kernel(x_ref, w_word_ref, w_fuse_ref, vec_ref, out_ref):
        # ---------------- packed small vectors (f32, static slices) ----------
        def vrow(i, width=two_h):
            return vec_ref[i:i + 1, 0:width]

        w_att = vrow(_ROW_W_ATT)
        b_word = vrow(_ROW_B_WORD)
        b_pos = vrow(_ROW_B_POS)
        b_cau = vrow(_ROW_B_CAU)
        b_mid = vrow(_ROW_B_MID)
        b_pe = vrow(_ROW_B_PE, C)
        b_ce = vrow(_ROW_B_CE, C)
        w_rank_e = vrow(_ROW_W_RANK_E)
        w_rank_c = vrow(_ROW_W_RANK_C)
        b_rank = vrow(_ROW_B_RANK, 1)                       # [1, 1]

        x = x_ref[...]                                      # [D*S, E] bf16

        # ---------------- E2E_PextE.get_clause_embedding --------------------
        # TODO(synk): word-level BiLSTM of E2E_PextE approximated by a tanh
        # projection of the same width (2*n_hidden); attention pooling kept.
        h = jnp.tanh(
            jnp.dot(x, w_word_ref[...], preferred_element_type=jnp.float32)
            + b_word)                                       # [D*S, 2H] f32
        h3 = h.reshape(D, S, two_h)                         # [D, S, 2H]
        att = jnp.sum(h3 * w_att, axis=-1)                  # [D, S]
        # exact softmax (feeds the whole chain)
        att = att - jnp.max(att, axis=-1, keepdims=True)
        ea = jnp.exp(att)
        alpha = ea / jnp.sum(ea, axis=-1, keepdims=True)    # [D, S]
        s_emb = jnp.sum(h3 * alpha[:, :, None], axis=1)     # [D, 2H]

        # ---------------- E2E_PextE.get_emotion_prediction -------------------
        # TODO(synk): clause-level BiLSTM approximated by a relu projection.
        # fused stage A: s_emb @ [w_pos | w_cau_s]
        f1 = jnp.dot(s_emb.astype(jnp.bfloat16), w_fuse_ref[0:two_h, :],
                     preferred_element_type=jnp.float32)    # [D, 4H]
        x_pos = jnp.maximum(f1[:, 0:two_h] + b_pos, 0.0)    # [D, 2H]
        cau_partial = f1[:, two_h:2 * two_h]                # s_emb @ w_cau_s

        # fused stage B: x_pos @ [w_mid_pos | w_pe(zero-pad)]
        f2 = jnp.dot(x_pos.astype(jnp.bfloat16),
                     w_fuse_ref[two_h:2 * two_h, :],
                     preferred_element_type=jnp.float32)    # [D, 4H]
        mid_pos = f2[:, 0:two_h]                            # x_pos @ w_mid_pos
        pos_logits = f2[:, two_h:two_h + C] + b_pe
        pos_logits = pos_logits - jnp.max(pos_logits, axis=-1, keepdims=True)
        ep = jnp.exp(pos_logits)
        pred_pos = ep / jnp.sum(ep, axis=-1, keepdims=True)  # exact: feeds x_cause

        # ------- get_cause_prediction( cat([s, pred_pos], -1) ) -------------
        # cat([s, pred_pos]) @ W_cau == s @ W_cau[:2H] + pred_pos @ W_cau[2H:]
        # The K=n_class part is a rank-n_class VPU update (no MXU fill/drain).
        xc = cau_partial + b_cau
        for c in range(C):
            xc = xc + pred_pos[:, c:c + 1] * vrow(_ROW_W_CAU_P0 + c)
        x_cause = jnp.maximum(xc, 0.0)                      # [D, 2H]

        # fused stage C: x_cause @ [w_mid_cau | w_ce(zero-pad)]
        f3 = jnp.dot(x_cause.astype(jnp.bfloat16),
                     w_fuse_ref[2 * two_h:3 * two_h, :],
                     preferred_element_type=jnp.float32)    # [D, 4H]
        mid_cau = f3[:, 0:two_h]                            # x_cause @ w_mid_cau
        cau_logits = f3[:, two_h:two_h + C] + b_ce
        cau_logits = cau_logits - jnp.max(cau_logits, axis=-1, keepdims=True)
        ec = jnp.exp(cau_logits)
        # terminal softmax -> EUP approx reciprocal is fine here
        pred_cause = ec * pl.reciprocal(
            jnp.sum(ec, axis=-1, keepdims=True), approx=True)

        # ---------- middle_layer( cat([x_pos, x_cause], -1) ) ---------------
        doc_sents_h = mid_pos + mid_cau + b_mid              # [D, 2H]

        # ---------------- RankCP.rank: pair scoring (this document) ---------
        # TODO(synk): RankCP's graph-attention layers / rel-pos embedding
        # omitted; the pairwise linear score is kept:
        #   linear(cat([h_i, h_j])) == h_i.w_e + h_j.w_c + b
        se = jnp.sum(doc_sents_h * w_rank_e, axis=-1, keepdims=True)      # [D,1]
        sc = jnp.sum(doc_sents_h[None, :, :] * w_rank_c, axis=-1)         # [1,D]
        couples = se + sc + b_rank                                        # [D,D]

        # ---------------- single full-width lane-dense store ----------------
        slab = jnp.concatenate(
            [couples, pred_pos, pred_cause,
             jnp.zeros((D, pad_tail), jnp.float32)], axis=-1)             # [D,128]
        out_ref[...] = slab

    return kernel


def make_params(key, emb_dim, n_hidden, n_class=2):
    two_h = 2 * n_hidden
    ks = jax.random.split(key, 19)

    def rnd(k, shape):
        return (0.1 * jax.random.normal(k, shape)).astype(jnp.float32)

    return dict(
        w_word=rnd(ks[0], (emb_dim, two_h)),
        b_word=rnd(ks[1], (1, two_h)),
        w_att=rnd(ks[2], (1, two_h)),
        w_pos=rnd(ks[3], (two_h, two_h)),
        b_pos=rnd(ks[4], (1, two_h)),
        w_pe=rnd(ks[5], (two_h, n_class)),
        b_pe=rnd(ks[6], (1, n_class)),
        w_cau_s=rnd(ks[7], (two_h, two_h)),       # rows [:2H] of W_cau
        w_cau_p=rnd(ks[8], (n_class, two_h)),     # rows [2H:] of W_cau
        b_cau=rnd(ks[9], (1, two_h)),
        w_ce=rnd(ks[10], (two_h, n_class)),
        b_ce=rnd(ks[11], (1, n_class)),
        w_mid_pos=rnd(ks[12], (two_h, two_h)),    # rows [:2H] of middle_layer W
        w_mid_cau=rnd(ks[13], (two_h, two_h)),    # rows [2H:] of middle_layer W
        b_mid=rnd(ks[14], (1, two_h)),
        w_rank_e=rnd(ks[15], (1, two_h)),
        w_rank_c=rnd(ks[16], (1, two_h)),
        b_rank=rnd(ks[17], (1, 1)),
    )


def _pack_params(params):
    """Pack weights into: bf16 word matrix, bf16 fused-RHS slab, f32 vec slab."""
    two_h = params["w_pos"].shape[0]
    n_class = params["w_pe"].shape[1]

    # Word projection weight: feeds the MXU only -> store as bf16.
    w_word = params["w_word"].astype(jnp.bfloat16)                    # [E, 2H]

    # Fused clause-level RHS: three stacked [2H, 4H] blocks (lane-dense).
    def lane_pad(m, width):
        return jnp.pad(m, ((0, 0), (0, width - m.shape[1])))

    fuse_a = jnp.concatenate([params["w_pos"], params["w_cau_s"]], axis=1)
    fuse_b = lane_pad(jnp.concatenate([params["w_mid_pos"], params["w_pe"]],
                                      axis=1), 2 * two_h)
    fuse_c = lane_pad(jnp.concatenate([params["w_mid_cau"], params["w_ce"]],
                                      axis=1), 2 * two_h)
    w_fuse = jnp.concatenate([fuse_a, fuse_b, fuse_c],
                             axis=0).astype(jnp.bfloat16)             # [6H, 4H]

    # Small-vector slab (kept f32: used in VPU/EUP elementwise math).
    def vrow(v, width=two_h):
        v = v.reshape(1, -1)
        if v.shape[1] < width:
            v = jnp.pad(v, ((0, 0), (0, width - v.shape[1])))
        return v.astype(jnp.float32)

    rows = [vrow(params["w_att"]), vrow(params["b_word"]), vrow(params["b_pos"]),
            vrow(params["b_cau"]), vrow(params["b_mid"]), vrow(params["b_pe"]),
            vrow(params["b_ce"]), vrow(params["w_rank_e"]),
            vrow(params["w_rank_c"]), vrow(params["b_rank"])]
    for c in range(n_class):
        rows.append(vrow(params["w_cau_p"][c]))
    vec = jnp.concatenate(rows, axis=0)            # [10 + n_class, 2H]
    return w_word, w_fuse, vec


def network_forward(x, params):
    B, D, S, E = x.shape
    two_h = params["w_pos"].shape[0]
    n_class = params["w_pe"].shape[1]
    assert D + 2 * n_class <= _OUT_WIDTH

    w_word, w_fuse, vec = _pack_params(params)
    # Layout / dtype plumbing in the wrapper: flatten and cast to bf16
    # (halves the only sizeable HBM->VMEM transfer).
    x_flat = x.reshape(B * D * S, E).astype(jnp.bfloat16)

    kernel = _make_kernel(D, S, E, two_h, n_class)

    out_slab = pl.pallas_call(
        kernel,
        grid=(B,),                                  # one document per grid step
        in_specs=[
            pl.BlockSpec((D * S, E), lambda b: (b, 0)),       # this doc's rows
            pl.BlockSpec(w_word.shape, lambda b: (0, 0)),
            pl.BlockSpec(w_fuse.shape, lambda b: (0, 0)),
            pl.BlockSpec(vec.shape, lambda b: (0, 0)),
        ],
        out_specs=pl.BlockSpec((D, _OUT_WIDTH), lambda b: (b, 0)),
        out_shape=jax.ShapeDtypeStruct((B * D, _OUT_WIDTH), jnp.float32),
        compiler_params=pltpu.CompilerParams(
            dimension_semantics=("parallel",),       # docs are independent
            vmem_limit_bytes=32 * 1024 * 1024),
    )(x_flat, w_word, w_fuse, vec)

    # Unpack from one contiguous slice of the lane-dense slab.
    body = out_slab[:, :D + 2 * n_class]
    couples_pred = body[:, :D].reshape(B, D, D).reshape(B, D * D)
    pred_pos = body[:, D:D + n_class].reshape(B, D, n_class)
    pred_cause = body[:, D + n_class:D + 2 * n_class].reshape(B, D, n_class)

    # emo_cau_pos: 1-indexed (emotion clause, cause clause) for every couple.
    emo = jnp.repeat(jnp.arange(1, D + 1, dtype=jnp.int32), D)
    cau = jnp.tile(jnp.arange(1, D + 1, dtype=jnp.int32), D)
    emo_cau_pos = jnp.stack([emo, cau], axis=-1)               # [D*D, 2]
    return couples_pred, emo_cau_pos, pred_pos, pred_cause


def network_reference(x, params):
    """Plain-JAX (f32) mirror of the module math, for a sanity check."""
    B, D, S, E = x.shape
    p = params
    h = jnp.tanh(jnp.einsum("bdse,eh->bdsh", x, p["w_word"]) + p["b_word"][0])
    att = jnp.sum(h * p["w_att"][0], axis=-1)
    alpha = jax.nn.softmax(att, axis=-1)
    s = jnp.sum(h * alpha[..., None], axis=2)
    x_pos = jax.nn.relu(s @ p["w_pos"] + p["b_pos"][0])
    pred_pos = jax.nn.softmax(x_pos @ p["w_pe"] + p["b_pe"][0], axis=-1)
    x_cause = jax.nn.relu(s @ p["w_cau_s"] + pred_pos @ p["w_cau_p"]
                          + p["b_cau"][0])
    pred_cause = jax.nn.softmax(x_cause @ p["w_ce"] + p["b_ce"][0], axis=-1)
    dsh = x_pos @ p["w_mid_pos"] + x_cause @ p["w_mid_cau"] + p["b_mid"][0]
    score_e = jnp.sum(dsh * p["w_rank_e"][0], axis=-1)         # [B, D]
    score_c = jnp.sum(dsh * p["w_rank_c"][0], axis=-1)         # [B, D]
    couples = score_e[:, :, None] + score_c[:, None, :] + p["b_rank"][0, 0]
    return couples.reshape(B, D * D), pred_pos, pred_cause


if __name__ == "__main__":
    key = jax.random.PRNGKey(0)
    k_x, k_p = jax.random.split(key)

    B, D, S, E, H = 2, 8, 8, 32, 16   # batch, doc_len, seq_len, emb_dim, n_hidden
    x = jax.random.normal(k_x, (B, D, S, E), dtype=jnp.float32)
    params = make_params(k_p, emb_dim=E, n_hidden=H)

    outs = network_forward(x, params)
    outs = jax.block_until_ready(outs)
    couples_pred, emo_cau_pos, pred_pos, pred_cause = outs

    assert couples_pred.shape == (B, D * D)
    assert emo_cau_pos.shape == (D * D, 2)
    assert pred_pos.shape == (B, D, 2)
    assert pred_cause.shape == (B, D, 2)

    ref_couples, ref_pos, ref_cause = network_reference(x, params)
    # Tolerance accounts for bf16 MXU operands (f32 reference).
    assert jnp.allclose(couples_pred, ref_couples, rtol=2e-2, atol=2e-2)
    assert jnp.allclose(pred_pos, ref_pos, rtol=2e-2, atol=2e-2)
    assert jnp.allclose(pred_cause, ref_cause, rtol=2e-2, atol=2e-2)

    print("KERNEL_OK")
</pallas_src>

<mosaic_0001>
module attributes {stable_mosaic.version = 11 : i64} {
  func.func @kernel(%arg0: i32, %arg1: memref<64x32xbf16, #tpu.memory_space<vmem>>, %arg2: memref<32x32xbf16, #tpu.memory_space<vmem>>, %arg3: memref<96x64xbf16, #tpu.memory_space<vmem>>, %arg4: memref<12x32xf32, #tpu.memory_space<vmem>>, %arg5: memref<8x128xf32, #tpu.memory_space<vmem>>) attributes {dimension_semantics = [#tpu.dimension_semantics<parallel>], iteration_bounds = array<i64: 2>, scalar_prefetch = 0 : i64, scratch_operands = 0 : i64, tpu.core_type = #tpu.core_type<tc>, window_params = [{transform_indices = @transform_0, window_bounds = array<i64: 64, 32>}, {pipeline_mode = #tpu.pipeline_mode<synchronous>, transform_indices = @transform_1, window_bounds = array<i64: 32, 32>}, {pipeline_mode = #tpu.pipeline_mode<synchronous>, transform_indices = @transform_2, window_bounds = array<i64: 96, 64>}, {pipeline_mode = #tpu.pipeline_mode<synchronous>, transform_indices = @transform_3, window_bounds = array<i64: 12, 32>}, {transform_indices = @transform_4, window_bounds = array<i64: 8, 128>}]} {
    %c0 = arith.constant 0 : index
    %c0_0 = arith.constant 0 : index
    %0 = vector.load %arg4[%c0, %c0_0] : memref<12x32xf32, #tpu.memory_space<vmem>>, vector<1x32xf32>
    %c1 = arith.constant 1 : index
    %c0_1 = arith.constant 0 : index
    %1 = vector.load %arg4[%c1, %c0_1] : memref<12x32xf32, #tpu.memory_space<vmem>>, vector<1x32xf32>
    %c2 = arith.constant 2 : index
    %c0_2 = arith.constant 0 : index
    %2 = vector.load %arg4[%c2, %c0_2] : memref<12x32xf32, #tpu.memory_space<vmem>>, vector<1x32xf32>
    %c3 = arith.constant 3 : index
    %c0_3 = arith.constant 0 : index
    %3 = vector.load %arg4[%c3, %c0_3] : memref<12x32xf32, #tpu.memory_space<vmem>>, vector<1x32xf32>
    %c4 = arith.constant 4 : index
    %c0_4 = arith.constant 0 : index
    %4 = vector.load %arg4[%c4, %c0_4] : memref<12x32xf32, #tpu.memory_space<vmem>>, vector<1x32xf32>
    %c5 = arith.constant 5 : index
    %c0_5 = arith.constant 0 : index
    %5 = vector.load %arg4[%c5, %c0_5] : memref<12x32xf32, #tpu.memory_space<vmem>>, vector<1x2xf32>
    %c6 = arith.constant 6 : index
    %c0_6 = arith.constant 0 : index
    %6 = vector.load %arg4[%c6, %c0_6] : memref<12x32xf32, #tpu.memory_space<vmem>>, vector<1x2xf32>
    %c7 = arith.constant 7 : index
    %c0_7 = arith.constant 0 : index
    %7 = vector.load %arg4[%c7, %c0_7] : memref<12x32xf32, #tpu.memory_space<vmem>>, vector<1x32xf32>
    %c8 = arith.constant 8 : index
    %c0_8 = arith.constant 0 : index
    %8 = vector.load %arg4[%c8, %c0_8] : memref<12x32xf32, #tpu.memory_space<vmem>>, vector<1x32xf32>
    %c9 = arith.constant 9 : index
    %c0_9 = arith.constant 0 : index
    %9 = vector.load %arg4[%c9, %c0_9] : memref<12x32xf32, #tpu.memory_space<vmem>>, vector<1x1xf32>
    %c0_10 = arith.constant 0 : index
    %c0_11 = arith.constant 0 : index
    %10 = vector.load %arg1[%c0_10, %c0_11] : memref<64x32xbf16, #tpu.memory_space<vmem>>, vector<64x32xbf16>
    %c0_12 = arith.constant 0 : index
    %c0_13 = arith.constant 0 : index
    %11 = vector.load %arg2[%c0_12, %c0_13] : memref<32x32xbf16, #tpu.memory_space<vmem>>, vector<32x32xbf16>
    %cst = arith.constant dense<0.000000e+00> : vector<64x32xf32>
    %12 = tpu.matmul %10, %11, %cst {dimension_numbers = #tpu.dot_dimension_numbers<[1], [0], [0], [1], [0, 0, 1, 1], [], []>} : vector<64x32xbf16>, vector<32x32xbf16>, vector<64x32xf32> -> vector<64x32xf32>
    %13 = vector.broadcast %1 : vector<1x32xf32> to vector<64x32xf32>
    %14 = arith.addf %12, %13 : vector<64x32xf32>
    %15 = math.tanh %14 : vector<64x32xf32>
    %16 = vector.shape_cast %15 : vector<64x32xf32> to vector<8x8x32xf32>
    %17 = vector.shape_cast %0 : vector<1x32xf32> to vector<1x1x32xf32>
    %18 = vector.broadcast %17 : vector<1x1x32xf32> to vector<8x8x32xf32>
    %19 = arith.mulf %16, %18 : vector<8x8x32xf32>
    %cst_14 = arith.constant dense<0.000000e+00> : vector<8x8xf32>
    %20 = vector.multi_reduction <add>, %19, %cst_14 [2] : vector<8x8x32xf32> to vector<8x8xf32>
    %cst_15 = arith.constant dense<0xFF800000> : vector<8xf32>
    %21 = vector.multi_reduction <maximumf>, %20, %cst_15 [1] : vector<8x8xf32> to vector<8xf32>
    %22 = vector.shape_cast %21 : vector<8xf32> to vector<8x1xf32>
    %23 = vector.broadcast %22 : vector<8x1xf32> to vector<8x8xf32>
    %24 = arith.subf %20, %23 : vector<8x8xf32>
    %25 = math.exp %24 : vector<8x8xf32>
    %cst_16 = arith.constant dense<0.000000e+00> : vector<8xf32>
    %26 = vector.multi_reduction <add>, %25, %cst_16 [1] : vector<8x8xf32> to vector<8xf32>
    %27 = vector.shape_cast %26 : vector<8xf32> to vector<8x1xf32>
    %28 = vector.broadcast %27 : vector<8x1xf32> to vector<8x8xf32>
    %29 = arith.divf %25, %28 : vector<8x8xf32>
    %30 = vector.shape_cast %29 : vector<8x8xf32> to vector<8x8x1xf32>
    %31 = vector.broadcast %30 : vector<8x8x1xf32> to vector<8x8x32xf32>
    %32 = arith.mulf %16, %31 : vector<8x8x32xf32>
    %cst_17 = arith.constant dense<0.000000e+00> : vector<8x32xf32>
    %33 = vector.multi_reduction <add>, %32, %cst_17 [1] : vector<8x8x32xf32> to vector<8x32xf32>
    %34 = arith.truncf %33 : vector<8x32xf32> to vector<8x32xbf16>
    %c0_18 = arith.constant 0 : index
    %c0_19 = arith.constant 0 : index
    %35 = vector.load %arg3[%c0_18, %c0_19] : memref<96x64xbf16, #tpu.memory_space<vmem>>, vector<32x64xbf16>
    %cst_20 = arith.constant dense<0.000000e+00> : vector<8x64xf32>
    %36 = tpu.matmul %34, %35, %cst_20 {dimension_numbers = #tpu.dot_dimension_numbers<[1], [0], [0], [1], [0, 0, 1, 1], [], []>} : vector<8x32xbf16>, vector<32x64xbf16>, vector<8x64xf32> -> vector<8x64xf32>
    %37 = vector.extract_strided_slice %36 {offsets = [0, 0], sizes = [8, 32], strides = [1, 1]} : vector<8x64xf32> to vector<8x32xf32>
    %38 = vector.broadcast %2 : vector<1x32xf32> to vector<8x32xf32>
    %39 = arith.addf %37, %38 : vector<8x32xf32>
    %cst_21 = arith.constant 0.000000e+00 : f32
    %40 = vector.broadcast %cst_21 : f32 to vector<8x32xf32>
    %41 = arith.maximumf %39, %40 : vector<8x32xf32>
    %42 = vector.extract_strided_slice %36 {offsets = [0, 32], sizes = [8, 32], strides = [1, 1]} : vector<8x64xf32> to vector<8x32xf32>
    %43 = arith.truncf %41 : vector<8x32xf32> to vector<8x32xbf16>
    %c32 = arith.constant 32 : index
    %c0_22 = arith.constant 0 : index
    %44 = vector.load %arg3[%c32, %c0_22] : memref<96x64xbf16, #tpu.memory_space<vmem>>, vector<32x64xbf16>
    %cst_23 = arith.constant dense<0.000000e+00> : vector<8x64xf32>
    %45 = tpu.matmul %43, %44, %cst_23 {dimension_numbers = #tpu.dot_dimension_numbers<[1], [0], [0], [1], [0, 0, 1, 1], [], []>} : vector<8x32xbf16>, vector<32x64xbf16>, vector<8x64xf32> -> vector<8x64xf32>
    %46 = vector.extract_strided_slice %45 {offsets = [0, 0], sizes = [8, 32], strides = [1, 1]} : vector<8x64xf32> to vector<8x32xf32>
    %47 = vector.extract_strided_slice %45 {offsets = [0, 32], sizes = [8, 2], strides = [1, 1]} : vector<8x64xf32> to vector<8x2xf32>
    %48 = vector.broadcast %5 : vector<1x2xf32> to vector<8x2xf32>
    %49 = arith.addf %47, %48 : vector<8x2xf32>
    %cst_24 = arith.constant dense<0xFF800000> : vector<8xf32>
    %50 = vector.multi_reduction <maximumf>, %49, %cst_24 [1] : vector<8x2xf32> to vector<8xf32>
    %51 = vector.shape_cast %50 : vector<8xf32> to vector<8x1xf32>
    %52 = vector.broadcast %51 : vector<8x1xf32> to vector<8x2xf32>
    %53 = arith.subf %49, %52 : vector<8x2xf32>
    %54 = math.exp %53 : vector<8x2xf32>
    %cst_25 = arith.constant dense<0.000000e+00> : vector<8xf32>
    %55 = vector.multi_reduction <add>, %54, %cst_25 [1] : vector<8x2xf32> to vector<8xf32>
    %56 = vector.shape_cast %55 : vector<8xf32> to vector<8x1xf32>
    %57 = vector.broadcast %56 : vector<8x1xf32> to vector<8x2xf32>
    %58 = arith.divf %54, %57 : vector<8x2xf32>
    %59 = vector.broadcast %3 : vector<1x32xf32> to vector<8x32xf32>
    %60 = arith.addf %42, %59 : vector<8x32xf32>
    %61 = vector.extract_strided_slice %58 {offsets = [0, 0], sizes = [8, 1], strides = [1, 1]} : vector<8x2xf32> to vector<8x1xf32>
    %c10 = arith.constant 10 : index
    %c0_26 = arith.constant 0 : index
    %62 = vector.load %arg4[%c10, %c0_26] : memref<12x32xf32, #tpu.memory_space<vmem>>, vector<1x32xf32>
    %63 = vector.broadcast %61 : vector<8x1xf32> to vector<8x32xf32>
    %64 = vector.broadcast %62 : vector<1x32xf32> to vector<8x32xf32>
    %65 = arith.mulf %63, %64 : vector<8x32xf32>
    %66 = arith.addf %60, %65 : vector<8x32xf32>
    %67 = vector.extract_strided_slice %58 {offsets = [0, 1], sizes = [8, 1], strides = [1, 1]} : vector<8x2xf32> to vector<8x1xf32>
    %c11 = arith.constant 11 : index
    %c0_27 = arith.constant 0 : index
    %68 = vector.load %arg4[%c11, %c0_27] : memref<12x32xf32, #tpu.memory_space<vmem>>, vector<1x32xf32>
    %69 = vector.broadcast %67 : vector<8x1xf32> to vector<8x32xf32>
    %70 = vector.broadcast %68 : vector<1x32xf32> to vector<8x32xf32>
    %71 = arith.mulf %69, %70 : vector<8x32xf32>
    %72 = arith.addf %66, %71 : vector<8x32xf32>
    %cst_28 = arith.constant 0.000000e+00 : f32
    %73 = vector.broadcast %cst_28 : f32 to vector<8x32xf32>
    %74 = arith.maximumf %72, %73 : vector<8x32xf32>
    %75 = arith.truncf %74 : vector<8x32xf32> to vector<8x32xbf16>
    %c64 = arith.constant 64 : index
    %c0_29 = arith.constant 0 : index
    %76 = vector.load %arg3[%c64, %c0_29] : memref<96x64xbf16, #tpu.memory_space<vmem>>, vector<32x64xbf16>
    %cst_30 = arith.constant dense<0.000000e+00> : vector<8x64xf32>
    %77 = tpu.matmul %75, %76, %cst_30 {dimension_numbers = #tpu.dot_dimension_numbers<[1], [0], [0], [1], [0, 0, 1, 1], [], []>} : vector<8x32xbf16>, vector<32x64xbf16>, vector<8x64xf32> -> vector<8x64xf32>
    %78 = vector.extract_strided_slice %77 {offsets = [0, 0], sizes = [8, 32], strides = [1, 1]} : vector<8x64xf32> to vector<8x32xf32>
    %79 = vector.extract_strided_slice %77 {offsets = [0, 32], sizes = [8, 2], strides = [1, 1]} : vector<8x64xf32> to vector<8x2xf32>
    %80 = vector.broadcast %6 : vector<1x2xf32> to vector<8x2xf32>
    %81 = arith.addf %79, %80 : vector<8x2xf32>
    %cst_31 = arith.constant dense<0xFF800000> : vector<8xf32>
    %82 = vector.multi_reduction <maximumf>, %81, %cst_31 [1] : vector<8x2xf32> to vector<8xf32>
    %83 = vector.shape_cast %82 : vector<8xf32> to vector<8x1xf32>
    %84 = vector.broadcast %83 : vector<8x1xf32> to vector<8x2xf32>
    %85 = arith.subf %81, %84 : vector<8x2xf32>
    %86 = math.exp %85 : vector<8x2xf32>
    %cst_32 = arith.constant dense<0.000000e+00> : vector<8xf32>
    %87 = vector.multi_reduction <add>, %86, %cst_32 [1] : vector<8x2xf32> to vector<8xf32>
    %88 = vector.shape_cast %87 : vector<8xf32> to vector<8x1xf32>
    %89 = tpu.reciprocal %88 {approx = true} : vector<8x1xf32> -> vector<8x1xf32>
    %90 = vector.broadcast %89 : vector<8x1xf32> to vector<8x2xf32>
    %91 = arith.mulf %86, %90 : vector<8x2xf32>
    %92 = arith.addf %46, %78 : vector<8x32xf32>
    %93 = vector.broadcast %4 : vector<1x32xf32> to vector<8x32xf32>
    %94 = arith.addf %92, %93 : vector<8x32xf32>
    %95 = vector.broadcast %7 : vector<1x32xf32> to vector<8x32xf32>
    %96 = arith.mulf %94, %95 : vector<8x32xf32>
    %cst_33 = arith.constant dense<0.000000e+00> : vector<8xf32>
    %97 = vector.multi_reduction <add>, %96, %cst_33 [1] : vector<8x32xf32> to vector<8xf32>
    %98 = vector.shape_cast %97 : vector<8xf32> to vector<8x1xf32>
    %99 = vector.shape_cast %94 : vector<8x32xf32> to vector<1x8x32xf32>
    %100 = vector.shape_cast %8 : vector<1x32xf32> to vector<1x1x32xf32>
    %101 = vector.broadcast %100 : vector<1x1x32xf32> to vector<1x8x32xf32>
    %102 = arith.mulf %99, %101 : vector<1x8x32xf32>
    %cst_34 = arith.constant dense<0.000000e+00> : vector<1x8xf32>
    %103 = vector.multi_reduction <add>, %102, %cst_34 [2] : vector<1x8x32xf32> to vector<1x8xf32>
    %104 = vector.broadcast %98 : vector<8x1xf32> to vector<8x8xf32>
    %105 = vector.broadcast %103 : vector<1x8xf32> to vector<8x8xf32>
    %106 = arith.addf %104, %105 : vector<8x8xf32>
    %107 = vector.broadcast %9 : vector<1x1xf32> to vector<8x8xf32>
    %108 = arith.addf %106, %107 : vector<8x8xf32>
    %cst_35 = arith.constant 0.000000e+00 : f32
    %109 = vector.broadcast %cst_35 : f32 to vector<8x116xf32>
    %110 = tpu.concatenate %108, %58, %91, %109 in 1 : vector<8x8xf32>, vector<8x2xf32>, vector<8x2xf32>, vector<8x116xf32> -> vector<8x128xf32>
    %c0_36 = arith.constant 0 : index
    %c0_37 = arith.constant 0 : index
    %111 = vector.load %arg5[%c0_36, %c0_37] : memref<8x128xf32, #tpu.memory_space<vmem>>, vector<8x128xf32>
    tpu.vector_store %arg5[%c0_36, %c0_37], %110 {strides = array<i32>} : memref<8x128xf32, #tpu.memory_space<vmem>>, vector<8x128xf32>,
    return
  }
  func.func @transform_0(%arg0: i32) -> (i32, i32) {
    %c0_i32 = arith.constant 0 : i32
    %c0_i32_0 = arith.constant 0 : i32
    return %arg0, %c0_i32 : i32, i32
  }
  func.func @transform_1(%arg0: i32) -> (i32, i32) {
    %c0_i32 = arith.constant 0 : i32
    %c0_i32_0 = arith.constant 0 : i32
    %c0_i32_1 = arith.constant 0 : i32
    return %c0_i32, %c0_i32_0 : i32, i32
  }
  func.func @transform_2(%arg0: i32) -> (i32, i32) {
    %c0_i32 = arith.constant 0 : i32
    %c0_i32_0 = arith.constant 0 : i32
    %c0_i32_1 = arith.constant 0 : i32
    return %c0_i32, %c0_i32_0 : i32, i32
  }
  func.func @transform_3(%arg0: i32) -> (i32, i32) {
    %c0_i32 = arith.constant 0 : i32
    %c0_i32_0 = arith.constant 0 : i32
    %c0_i32_1 = arith.constant 0 : i32
    return %c0_i32, %c0_i32_0 : i32, i32
  }
  func.func @transform_4(%arg0: i32) -> (i32, i32) {
    %c0_i32 = arith.constant 0 : i32
    %c0_i32_0 = arith.constant 0 : i32
    return %arg0, %c0_i32 : i32, i32
  }
}

</mosaic_0001>

<bundles_post_ra>
// kernel: tpu_custom_call.1
= control target key start
LH: loop header
LB: loop body
LE: loop exit
PB: predicated region body
PF: predicated region fallthrough
CT: control target
= control target key end

     0   :  { %9 = vsyncpa [#allocation3], 0  ;;  %s1829_s0 = inlined_call_operand.vmem [shape: bf16[128,32], index: 0, kind: input, shape index: {}]   ;;  %s1830_s1 = inlined_call_operand.vmem [shape: bf16[32,32], index: 1, kind: input, shape index: {}]   ;;  %s1831_s2 = inlined_call_operand.vmem [shape: bf16[96,64], index: 2, kind: input, shape index: {}]   ;;  %s1832_s3 = inlined_call_operand.vmem [shape: f32[12,32], index: 3, kind: input, shape index: {}]   ;;  %s1833_s4 = inlined_call_operand.hbm [shape: f32[16,128], index: 4, kind: output, shape index: {}]  }
   0x1   :  { %11 = vsyncpa [#allocation3 + $0x1], 0  ;;  %s1490_s15 = smov 0   ;;  %s1492_s16 = smov 0  }
   0x2   :  { %s1494_s17 = smov 0   ;;  %s1496_s18 = smov 0  }
   0x3 LB: > { %s1511_s19 = sadd.s32 4294967295, %s1453_s18   ;;  %s1178_s20 = sadd.s32 4294967294, %s1453_s18   ;;  %s1453_s18 = sphi %s1496_s18, %s1839_s18   ;;  %s1449_s17 = sphi %s1494_s17, %s1838_s17   ;;  %s1445_s16 = sphi %s1492_s16, %s1837_s16   ;;  %s1441_s15 = sphi %s1490_s15, %s1836_s15  }
   0x4   : > { %s1515_s21 = sadd.s32 1, %s1453_s18   ;;  %s113_s22 = sadd.s32 1, %s1449_s17 }
   0x5   : > { %s110_s23 = ssub.s32 %s1453_s18, %s1515_s21  ;;  %p123_p0 = scmp.ne.s32.totalorder %s1449_s17, %s1445_s16 }
   0x6   : > { %p111_p1 = scmp.eq.s32.totalorder %s110_s23, 0  ;;  %p124_p2 = scmp.eq.s32.totalorder %s1511_s19, 1 }
   0x7   : > { %p129_p3 = scmp.ne.s32.totalorder %s1445_s16, %s1441_s15  ;;  %p130_p4 = scmp.eq.s32.totalorder %s1178_s20, 1 }
   0x8   : > { %s1526_s24 = scalar_select %p111_p1, %s1449_s17, %s113_s22  }
   0x9   : > { %p1528_p5 = por %p124_p2, %p123_p0  ;;  %p1532_p6 = por %p130_p4, %p129_p3 }
   0xa   : > { %p1181_p7 = scmp.ge.s32.totalorder %s1453_s18, 1  ;;  %p166_p8 = scmp.lt.s32.totalorder %s1453_s18, 3 }
   0xc   : > { %p167_p9 = pnand %p1181_p7, %p166_p8 }
   0xd   : > { %s1183_s29 = sshll.u32 (!%p167_p9), %s1511_s19, 3  ;;  %s1458_s7 = smov (!%p167_p9), 32  }
   0xe   : > { %170 = sbr.rel (%p167_p9) target bundleno = 2977 (0xba1), region = 36  ;;  %p193_p10 = scmp.lt.s32.totalorder (!%p167_p9), %s1183_s29, 15 }
   0xf   : > { %s1459_s10 = smov (!%p167_p9), 96   ;;  %s1462_s20 = smov (!%p167_p9), 104  }
  0x10   : > { %s1463_s22 = smov (!%p167_p9), 106   ;;  %s189_s23 = sand.u32 (!%p167_p9), 1, %s1445_s16  }
  0x11   : > { %s1182_s28 = sshll.u32 (!%p167_p9), %s189_s23, 3 }
  0x13   : > { %v1325_v0 = vld [vmem:[%s1830_s1 + $0x8] sm:$0xff]   ;;  %v1326_v1 = vld [vmem:[%s1830_s1] sm:$0xff]   ;;  %s1841_s29 = smov (!%p193_p10, %s1183_s29), 15  ;;  %vm257_vm0 = vcmask 261120   ;;  %v387_v48 = vlaneseq  ;;  %vm421_vm1 = vcmask 1041409   ;;  %vm423_vm2 = vcmask 1042434  }
  0x14   : > { %1234 = vmatprep.subr.bf16.mxu0 %v1325_v0  ;;  %s1184_s6 = sshll.u32 %s1841_s29, 2  ;;  %v1185_v6 = vld [vmem:[%s1832_s3 + $0x1] ss:$0 sm:$0xff]  ;;  %v1196_v22 = vld [vmem:[%s1832_s3] ss:$0 sm:$0xff]  ;;  %vm425_vm3 = vcmask 1043459  }
  0x15   : > { %1235 = vmatpush3.bf16.msra.mxu0 %v1325_v0  ;;  %s196_s9 = scalar_lea.vmem %s1829_s0, %s1184_s6  ;;  %v388_v49 = vand.u32 127, %v387_v48  ;;  %v1590_v50 = vshrl.u32 %v387_v48, 7  ;;  %vm427_vm4 = vcmask 1044484   ;;  %vm429_vm5 = vcmask 1045509   ;;  %s191_s29 = scalar_lea.vmem [#allocation2], %s1182_s28 }
  0x16   : > { %1236 = vmatprep.subr.bf16.mxu0 %v1326_v1  ;;  %v1327_v2 = vld [vmem:[%s196_s9] sm:$0xff]   ;;  %v1328_v3 = vld [vmem:[%s196_s9 + $0x8] sm:$0xff]   ;;  %v1329_v4 = vld [vmem:[%s196_s9 + $0x10] sm:$0xff]   ;;  %vm431_vm6 = vcmask 1046534   ;;  %vm433_vm7 = vcmask 1047559   ;;  %vm436_vm8 = vcmask 64512  }
  0x17   : > { %1238 = vmatprep.mubr.msk.bf16.mxu0 %vm257_vm0, %v1327_v2  ;;  %v1330_v5 = vld [vmem:[%s196_s9 + $0x18] sm:$0xff]   ;;  %v1593_v53 = vsub.s32 %v388_v49, %v1590_v50  ;;  %vm1457_vm9 = vmmov 0   ;;  %vm907_vm10 = vcmask 277760   ;;  %vm918_vm11 = vcmask 15360   ;;  %s1119_s30 = sshll.u32 %s191_s29, 4  ;;  %s1106_s9 = scalar_lea.sflag [#allocation3], %s189_s23  ;;  %s1120_s30 = int_to_ptr.vmem [resolvable:$true] %s1119_s30 }
  0x18   : > { %vm1100_vm12 = vcmask 80896   ;;  %vm1102_vm13 = vcmask 97280  }
  0x19   : > { %1237 = vmatpush3.bf16.msra.mxu0 %v1326_v1 }
  0x1c   : > { %1239 = vmatmul.mubr.msk.bf16.vlgmr.msra.gmra.mxu0 %vm257_vm0, %v1328_v3 }
  0x1d   : > { %1242 = vmatprep.mubr.msk.bf16.mxu0 %vm257_vm0, %v1329_v4 }
  0x24   : > { %1243 = vmatmul.mubr.msk.bf16.gmra.mxu0 %vm257_vm0, %v1330_v5 }
  0xdc   : > { %v1240_v7 = vpop.f32.mrf.mxu0 }
  0xdd   : > { %v313_v8 = vadd.f32 %v1240_v7, %v1185_v6 }
  0xde   : > { %v304_v9 = vpop.f32.mrf.mxu0 }
  0xdf   : > { %1337 = vtanh.f32 %v313_v8  ;;  %v305_v10 = vadd.f32 %v1185_v6, %v304_v9 }
  0xe0   : > { %v1241_v11 = vpop.f32.mrf.mxu0 }
  0xe1   : > { %1339 = vtanh.f32 %v305_v10  ;;  %v316_v12 = vadd.f32 %v1241_v11, %v1185_v6 }
  0xe2   : > { %v307_v13 = vpop.f32.mrf.mxu0 }
  0xe3   : > { %1341 = vtanh.f32 %v316_v12  ;;  %v308_v14 = vadd.f32 %v1185_v6, %v307_v13  ;;  %v1455_v12 = vmov 0   ;;  %v443_v13 = vsub.s32 0, %v1590_v50 }
  0xe4   : > { %v1244_v15 = vpop.f32.mrf.mxu0  ;;  %1321 = vset.pattern.permute.xlu0 %v1455_v12  ;;  %1320 = vset.pattern.permute.xlu1 %v1455_v12 }
  0xe5   : > { %1343 = vtanh.f32 %v308_v14  ;;  %v329_v16 = vadd.f32 %v1244_v15, %v1185_v6  ;;  %v447_v14 = vsub.s32 1, %v1590_v50  ;;  %v451_v15 = vsub.s32 2, %v1590_v50 }
  0xe6   : > { %v320_v17 = vpop.f32.mrf.mxu0 }
  0xe7   : > { %v321_v18 = vadd.f32 %v1185_v6, %v320_v17  ;;  %1345 = vtanh.f32 %v329_v16  ;;  %v455_v16 = vsub.s32 3, %v1590_v50 }
  0xe8   : > { %v1245_v19 = vpop.f32.mrf.mxu0 }
  0xe9   : > { %1347 = vtanh.f32 %v321_v18  ;;  %v332_v20 = vadd.f32 %v1245_v19, %v1185_v6 }
  0xea   : > { %v323_v21 = vpop.f32.mrf.mxu0 }
  0xeb   : > { %v324_v23 = vadd.f32 %v1185_v6, %v323_v21  ;;  %1349 = vtanh.f32 %v332_v20  ;;  %v459_v21 = vsub.s32 4, %v1590_v50 }
  0xec   : > { %v1558_v24 = vpop.eup %1337 }
  0xed   : > { %1351 = vtanh.f32 %v324_v23  ;;  %v349_v25 = vmul.f32 %v1558_v24, %v1196_v22 }
  0xee   : > { %v1561_v26 = vpop.eup %1339 }
  0xef   : > { %v361_v27 = vsel %vm257_vm0, %v349_v25, 0.0  ;;  %v347_v28 = vmul.f32 %v1561_v26, %v1196_v22 }
  0xf0   : > { %v1565_v29 = vpop.eup %1341  ;;  %362 = vadd.xlane.f32.xlu1 %v361_v27 }
  0xf1   : > { %v355_v30 = vsel %vm257_vm0, %v347_v28, 0.0  ;;  %v350_v31 = vmul.f32 %v1565_v29, %v1196_v22 }
  0xf2   : > { %v1569_v32 = vpop.eup %1343  ;;  %356 = vadd.xlane.f32.xlu0 %v355_v30 }
  0xf3   : > { %v364_v33 = vsel %vm257_vm0, %v350_v31, 0.0  ;;  %v348_v34 = vmul.f32 %v1569_v32, %v1196_v22  ;;  %v463_v31 = vsub.s32 5, %v1590_v50 }
  0xf4   : > { %365 = vadd.xlane.f32.xlu1 %v364_v33  ;;  %v1573_v35 = vpop.eup %1345 }
  0xf5   : > { %v358_v36 = vsel %vm257_vm0, %v348_v34, 0.0  ;;  %v353_v41 = vmul.f32 %v1573_v35, %v1196_v22 }
  0xf6   : > { %v1576_v37 = vpop.eup %1347  ;;  %359 = vadd.xlane.f32.xlu0 %v358_v36 }
  0xf7   : > { %v351_v38 = vmul.f32 %v1576_v37, %v1196_v22  ;;  %v373_v45 = vsel %vm257_vm0, %v353_v41, 0.0 }
  0xf8   : > { %v1579_v39 = vpop.eup %1349 }
  0xf9   : > { %v367_v40 = vsel %vm257_vm0, %v351_v38, 0.0  ;;  %v354_v46 = vmul.f32 %v1579_v39, %v1196_v22  ;;  %v467_v38 = vsub.s32 6, %v1590_v50 }
  0xfa   : > { %v1583_v42 = vpop.eup %1351  ;;  %368 = vadd.xlane.f32.xlu0 %v367_v40 }
  0xfb   : > { %v352_v43 = vmul.f32 %v1583_v42, %v1196_v22  ;;  %v376_v47 = vsel %vm257_vm0, %v354_v46, 0.0 }
  0xfd   : > { %v370_v44 = vsel %vm257_vm0, %v352_v43, 0.0 }
  0xfe   : > { %371 = vadd.xlane.f32.xlu1 %v370_v44  ;;  %374 = vadd.xlane.f32.xlu0 %v373_v45  ;;  %v471_v44 = vsub.s32 7, %v1590_v50 }
 0x102   : > { %377 = vadd.xlane.f32.xlu1 %v376_v47 }
 0x179   : > { %v363_v51 = vpop.xlane.xlu1 %362 }
 0x17a   : > { %v400_v57 = vrot.slane %v363_v51, %v1593_v53 }
 0x17b   : > { %v357_v52 = vpop.xlane.xlu0 %356 }
 0x17c   : > { %v392_v55 = vrot.slane %v357_v52, %v1593_v53 }
 0x17d   : > { %v366_v58 = vpop.xlane.xlu1 %365 }
 0x17e   : > { %v404_v62 = vrot.slane %v366_v58, %v1593_v53 }
 0x17f   : > { %v360_v54 = vpop.xlane.xlu0 %359 }
 0x180   : > { %v396_v56 = vrot.slane %v360_v54, %v1593_v53 }
 0x182   : > { %v422_v59 = vsel %vm421_vm1, %v396_v56, %v392_v55 }
 0x183   : > { %v424_v60 = vsel %vm423_vm2, %v400_v57, %v422_v59  ;;  %v369_v61 = vpop.xlane.xlu0 %368 }
 0x184   : > { %v408_v63 = vrot.slane %v369_v61, %v1593_v53  ;;  %v426_v0 = vsel %vm425_vm3, %v404_v62, %v424_v60 }
 0x186   : > { %v428_v4 = vsel %vm427_vm4, %v408_v63, %v426_v0 }
 0x187   : > { %v372_v1 = vpop.xlane.xlu1 %371  ;;  %v375_v2 = vpop.xlane.xlu0 %374 }
 0x188   : > { %v412_v3 = vrot.slane %v372_v1, %v1593_v53  ;;  %v416_v5 = vrot.slane %v375_v2, %v1593_v53 }
 0x18a   : > { %v430_v6 = vsel %vm429_vm5, %v412_v3, %v428_v4 }
 0x18b   : > { %v378_v7 = vpop.xlane.xlu1 %377  ;;  %v432_v9 = vsel %vm431_vm6, %v416_v5, %v430_v6 }
 0x18c   : > { %v420_v8 = vrot.slane %v378_v7, %v1593_v53 }
 0x18e   : > { %v434_v10 = vsel %vm433_vm7, %v420_v8, %v432_v9 }
 0x18f   : > { %v437_v11 = vsel %vm436_vm8, %v434_v10, -inf }
 0x190   : > { %438 = vmax.xlane.f32.xlu0 %v437_v11 }
 0x219   : > { %v439_v17 = vpop.xlane.xlu0 %438 }
 0x21a   : > { %v444_v18 = vrot.slane %v439_v17, %v443_v13  ;;  %v448_v19 = vrot.slane %v439_v17, %v447_v14  ;;  %v452_v20 = vrot.slane %v439_v17, %v451_v15  ;;  %v456_v22 = vrot.slane %v439_v17, %v455_v16 }
 0x21b   : > { %v460_v33 = vrot.slane %v439_v17, %v459_v21  ;;  %v464_v40 = vrot.slane %v439_v17, %v463_v31  ;;  %v468_v45 = vrot.slane %v439_v17, %v467_v38  ;;  %v472_v48 = vrot.slane %v439_v17, %v471_v44 }
 0x21c   : > { %v481_v23 = vsub.f32 %v357_v52, %v444_v18  ;;  %v482_v25 = vsub.f32 %v360_v54, %v448_v19  ;;  %v483_v27 = vsub.f32 %v363_v51, %v452_v20  ;;  %v484_v34 = vsub.f32 %v366_v58, %v456_v22 }
 0x21d   : > { %v485_v41 = vsub.f32 %v369_v61, %v460_v33  ;;  %v486_v46 = vsub.f32 %v372_v1, %v464_v40  ;;  %v487_v49 = vsub.f32 %v375_v2, %v468_v45  ;;  %v488_v55 = vsub.f32 %v378_v7, %v472_v48 }
 0x21e   : > { %v489_v28 = vmul.f32 1.442695, %v481_v23  ;;  %v491_v30 = vmul.f32 1.442695, %v482_v25  ;;  %v493_v36 = vmul.f32 1.442695, %v483_v27 }
 0x21f   : > { %v495_v43 = vmul.f32 1.442695, %v484_v34  ;;  %v497_v47 = vmul.f32 1.442695, %v485_v41  ;;  %v499_v51 = vmul.f32 1.442695, %v486_v46 }
 0x220   : > { %1353 = vpow2.f32 %v489_v28  ;;  %v501_v56 = vmul.f32 1.442695, %v487_v49  ;;  %v503_v58 = vmul.f32 1.442695, %v488_v55 }
 0x221   : > { %1355 = vpow2.f32 %v491_v30 }
 0x222   : > { %1357 = vpow2.f32 %v493_v36 }
 0x223   : > { %1359 = vpow2.f32 %v495_v43 }
 0x224   : > { %1361 = vpow2.f32 %v497_v47 }
 0x225   : > { %1363 = vpow2.f32 %v499_v51 }
 0x226   : > { %1365 = vpow2.f32 %v501_v56 }
 0x227   : > { %1367 = vpow2.f32 %v503_v58 }
 0x22d   : > { %v1354_v52 = vpop.eup %1353 }
 0x22e   : > { %v1356_v54 = vpop.eup %1355  ;;  %514 = vperm.xlu1 %1320, %v1354_v52  }
 0x22f   : > { %517 = vperm.xlu0 %1321, %v1356_v54   ;;  %v1358_v57 = vpop.eup %1357 }
 0x230   : > { %v1360_v59 = vpop.eup %1359 }
 0x231   : > { %v1635_v60 = vpop.eup %1361 }
 0x232   : > { %520 = vperm.xlu1 %1320, %v1358_v57   ;;  %v1638_v61 = vpop.eup %1363 }
 0x233   : > { %v1641_v62 = vpop.eup %1365 }
 0x234   : > { %v1644_v63 = vpop.eup %1367 }
 0x236   : > { %523 = vperm.xlu1 %1320, %v1360_v59  }
 0x23a   : > { %526 = vperm.xlu1 %1320, %v1635_v60  }
 0x23e   : > { %529 = vperm.xlu1 %1320, %v1638_v61  }
 0x242   : > { %532 = vperm.xlu1 %1320, %v1641_v62  }
 0x246   : > { %535 = vperm.xlu1 %1320, %v1644_v63  }
 0x2a9   : > { %v515_v0 = vpop.permute.xlu1 %514 }
 0x2aa   : > { %v518_v4 = vpop.permute.xlu0 %517  ;;  %v540_v7 = vrot.slane %v515_v0, %v1593_v53 }
 0x2ab   : > { %v544_v6 = vrot.slane %v518_v4, %v1593_v53 }
 0x2ad   : > { %v521_v1 = vpop.permute.xlu1 %520  ;;  %v569_v12 = vsel %vm421_vm1, %v544_v6, %v540_v7 }
 0x2ae   : > { %v548_v8 = vrot.slane %v521_v1, %v1593_v53 }
 0x2b0   : > { %v570_v18 = vsel %vm423_vm2, %v548_v8, %v569_v12 }
 0x2b1   : > { %v524_v2 = vpop.permute.xlu1 %523 }
 0x2b2   : > { %v552_v9 = vrot.slane %v524_v2, %v1593_v53 }
 0x2b4   : > { %v571_v20 = vsel %vm425_vm3, %v552_v9, %v570_v18 }
 0x2b5   : > { %v527_v3 = vpop.permute.xlu1 %526 }
 0x2b6   : > { %v556_v10 = vrot.slane %v527_v3, %v1593_v53 }
 0x2b8   : > { %v572_v22 = vsel %vm427_vm4, %v556_v10, %v571_v20 }
 0x2b9   : > { %v530_v5 = vpop.permute.xlu1 %529 }
 0x2ba   : > { %v560_v17 = vrot.slane %v530_v5, %v1593_v53 }
 0x2bc   : > { %v573_v25 = vsel %vm429_vm5, %v560_v17, %v572_v22 }
 0x2bd   : > { %v533_v11 = vpop.permute.xlu1 %532 }
 0x2be   : > { %v564_v19 = vrot.slane %v533_v11, %v1593_v53 }
 0x2c0   : > { %v574_v28 = vsel %vm431_vm6, %v564_v19, %v573_v25 }
 0x2c1   : > { %v536_v23 = vpop.permute.xlu1 %535 }
 0x2c2   : > { %v568_v27 = vrot.slane %v536_v23, %v1593_v53 }
 0x2c4   : > { %v575_v30 = vsel %vm433_vm7, %v568_v27, %v574_v28 }
 0x2c5   : > { %v577_v33 = vsel %vm436_vm8, %v575_v30, 0.0 }
 0x2c6   : > { %578 = vadd.xlane.f32.xlu1 %v577_v33 }
 0x34f   : > { %v579_v34 = vpop.xlane.xlu1 %578 }
 0x350   : > { %v584_v36 = vrot.slane %v579_v34, %v443_v13  ;;  %v588_v40 = vrot.slane %v579_v34, %v447_v14  ;;  %v592_v41 = vrot.slane %v579_v34, %v451_v15  ;;  %v596_v43 = vrot.slane %v579_v34, %v455_v16 }
 0x351   : > { %v600_v45 = vrot.slane %v579_v34, %v459_v21  ;;  %v604_v13 = vrot.slane %v579_v34, %v463_v31  ;;  %v608_v15 = vrot.slane %v579_v34, %v467_v38  ;;  %v612_v21 = vrot.slane %v579_v34, %v471_v44  ;;  %v1331_v44 = vld [vmem:[%s1831_s2 + $0x8] sm:$0xff]  }
 0x352   : > { %1369 = vrcp.f32 %v584_v36 }
 0x353   : > { %1371 = vrcp.f32 %v588_v40 }
 0x354   : > { %1373 = vrcp.f32 %v592_v41 }
 0x355   : > { %1375 = vrcp.f32 %v596_v43 }
 0x356   : > { %1377 = vrcp.f32 %v600_v45 }
 0x357   : > { %1379 = vrcp.f32 %v604_v13 }
 0x358   : > { %1381 = vrcp.f32 %v608_v15 }
 0x359   : > { %1383 = vrcp.f32 %v612_v21 }
 0x35f   : > { %v1370_v46 = vpop.eup %1369 }
 0x360   : > { %v622_v47 = vmul.f32 %v1370_v46, %v1354_v52  ;;  %v1372_v14 = vpop.eup %1371 }
 0x361   : > { %v624_v48 = vmul.f32 %v1372_v14, %v1356_v54  ;;  %v1374_v49 = vpop.eup %1373 }
 0x362   : > { %639 = vperm.xlu0 %1321, %v622_v47   ;;  %v626_v16 = vmul.f32 %v1374_v49, %v1358_v57  ;;  %v1376_v51 = vpop.eup %1375 }
 0x363   : > { %v628_v52 = vmul.f32 %v1376_v51, %v1360_v59  ;;  %v1378_v55 = vpop.eup %1377  ;;  %v1456_v59 = vmov 0.0  }
 0x364   : > { %v630_v31 = vmul.f32 %v1378_v55, %v1635_v60  ;;  %v1380_v54 = vpop.eup %1379  ;;  %1246 = vmatprep.subr.bf16.mxu1 %v1456_v59  ;;  %1250 = vmatprep.mubr.msk.bf16.mxu1 %vm1457_vm9, %v1456_v59  ;;  %v1332_v60 = vld [vmem:[%s1831_s2] sm:$0xff]  }
 0x365   : > { %v632_v56 = vmul.f32 %v1380_v54, %v1638_v61  ;;  %v1382_v38 = vpop.eup %1381  ;;  %1247 = vmatpush3.bf16.msra.mxu1 %v1331_v44  ;;  %1262 = vmatprep.subr.bf16.mxu0 %v1456_v59 }
 0x366   : > { %644 = vperm.xlu0 %1321, %v624_v48   ;;  %v634_v57 = vmul.f32 %v1382_v38, %v1641_v62  ;;  %v1384_v58 = vpop.eup %1383  ;;  %1248 = vmatprep.subr.bf16.mxu1 %v1456_v59 }
 0x367   : > { %v636_v50 = vmul.f32 %v1384_v58, %v1644_v63  ;;  %1266 = vmatprep.mubr.msk.bf16.mxu0 %vm1457_vm9, %v1456_v59 }
 0x369   : > { %1249 = vmatpush3.bf16.msra.mxu1 %v1332_v60 }
 0x36a   : > { %649 = vperm.xlu0 %1321, %v626_v16   ;;  %1254 = vmatprep.subr.bf16.mxu1 %v1456_v59 }
 0x36e   : > { %654 = vperm.xlu0 %1321, %v628_v52  }
 0x372   : > { %659 = vperm.xlu0 %1321, %v630_v31  }
 0x376   : > { %664 = vperm.xlu0 %1321, %v632_v56  }
 0x37a   : > { %669 = vperm.xlu0 %1321, %v634_v57  }
 0x37e   : > { %674 = vperm.xlu0 %1321, %v636_v50  }
 0x3dd   : > { %v640_v61 = vpop.permute.xlu0 %639 }
 0x3de   : > { %v677_v63 = vmul.f32 %v1561_v26, %v640_v61 }
 0x3e0   : > { %v685_v3 = vsel %vm257_vm0, %v677_v63, 0.0 }
 0x3e1   : > { %v645_v62 = vpop.permute.xlu0 %644  ;;  %v686_v7 = vrot.slane %v685_v3, 4 }
 0x3e2   : > { %v678_v0 = vmul.f32 %v1569_v32, %v645_v62 }
 0x3e3   : > { %v687_v32 = vadd.f32 %v686_v7, %v685_v3 }
 0x3e4   : > { %v692_v1 = vsel %vm257_vm0, %v678_v0, 0.0 }
 0x3e5   : > { %v650_v2 = vpop.permute.xlu0 %649  ;;  %v693_v5 = vrot.slane %v692_v1, 4  ;;  %v688_v25 = vrot.slane %v687_v32, 2 }
 0x3e6   : > { %v679_v4 = vmul.f32 %v1558_v24, %v650_v2 }
 0x3e7   : > { %v694_v11 = vadd.f32 %v693_v5, %v692_v1  ;;  %v689_v41 = vadd.f32 %v688_v25, %v687_v32 }
 0x3e8   : > { %v699_v6 = vsel %vm257_vm0, %v679_v4, 0.0 }
 0x3e9   : > { %v700_v8 = vrot.slane %v699_v6, 4  ;;  %v655_v9 = vpop.permute.xlu0 %654  ;;  %v695_v20 = vrot.slane %v694_v11, 2  ;;  %v690_v16 = vrot.slane %v689_v41, 1 }
 0x3ea   : > { %v680_v10 = vmul.f32 %v1565_v29, %v655_v9 }
 0x3eb   : > { %v701_v12 = vadd.f32 %v700_v8, %v699_v6  ;;  %v696_v33 = vadd.f32 %v695_v20, %v694_v11  ;;  %v691_v58 = vadd.f32 %v690_v16, %v689_v41 }
 0x3ec   : > { %v706_v26 = vsel %vm257_vm0, %v680_v10, 0.0 }
 0x3ed   : > { %v707_v17 = vrot.slane %v706_v26, 4  ;;  %v660_v18 = vpop.permute.xlu0 %659  ;;  %v702_v24 = vrot.slane %v701_v12, 2  ;;  %v697_v13 = vrot.slane %v696_v33, 1  ;;  %v741_v4 = vpack.c.bf16 %v691_v58, %v691_v58 }
 0x3ee   : > { %v681_v19 = vmul.f32 %v1576_v37, %v660_v18 }
 0x3ef   : > { %v708_v22 = vadd.f32 %v707_v17, %v706_v26  ;;  %v703_v36 = vadd.f32 %v702_v24, %v701_v12  ;;  %v698_v54 = vadd.f32 %v697_v13, %v696_v33  ;;  %v761_v26 = vunpack.c.l.b16 %v741_v4 }
 0x3f0   : > { %v713_v23 = vsel %vm257_vm0, %v681_v19, 0.0 }
 0x3f1   : > { %v709_v27 = vrot.slane %v708_v22, 2  ;;  %v714_v28 = vrot.slane %v713_v23, 4  ;;  %v665_v30 = vpop.permute.xlu0 %664  ;;  %v704_v48 = vrot.slane %v703_v36, 1  ;;  %v742_v63 = vpack.c.bf16 %v698_v54, %v698_v54 }
 0x3f2   : > { %v682_v29 = vmul.f32 %v1583_v42, %v665_v30 }
 0x3f3   : > { %v715_v34 = vadd.f32 %v714_v28, %v713_v23  ;;  %v710_v43 = vadd.f32 %v709_v27, %v708_v22  ;;  %v705_v38 = vadd.f32 %v704_v48, %v703_v36  ;;  %v762_v8 = vunpack.c.l.b16 %v742_v63  ;;  %v1205_v63 = vld [vmem:[%s1832_s3 + $0x3] ss:$0 sm:$0xff] }
 0x3f4   : > { %v720_v40 = vsel %vm257_vm0, %v682_v29, 0.0 }
 0x3f5   : > { %v716_v45 = vrot.slane %v715_v34, 2  ;;  %v670_v37 = vpop.permute.xlu0 %669  ;;  %v721_v46 = vrot.slane %v720_v40, 4  ;;  %v711_v42 = vrot.slane %v710_v43, 1  ;;  %v743_v2 = vpack.c.bf16 %v705_v38, %v705_v38 }
 0x3f6   : > { %v683_v47 = vmul.f32 %v1573_v35, %v670_v37  ;;  %v769_v20 = vsel %vm421_vm1, %v762_v8, %v761_v26  ;;  %v1200_v37 = vld [vmem:[%s1832_s3 + $0x2] ss:$0 sm:$0xff]  ;;  %v1211_v8 = vld [vmem:[%s1832_s3 + $0x6] ss:$0 sm:$0xff] }
 0x3f7   : > { %v717_v14 = vadd.f32 %v716_v45, %v715_v34  ;;  %v722_v15 = vadd.f32 %v721_v46, %v720_v40  ;;  %v712_v50 = vadd.f32 %v711_v42, %v710_v43  ;;  %v763_v12 = vunpack.c.l.b16 %v743_v2  ;;  %v1333_v40 = vld [vmem:[%s1831_s2 + $0x18] sm:$0xff]   ;;  %v1334_v43 = vld [vmem:[%s1831_s2 + $0x10] sm:$0xff]   ;;  %v1204_v45 = vld [vmem:[%s1832_s3 + $0x5] ss:$0 sm:$0xff] }
 0x3f8   : > { %v727_v49 = vsel %vm257_vm0, %v683_v47, 0.0  ;;  %903 = vrot.lane.b32.xlu1 %v1204_v45, %s1458_s7  ;;  %v1335_v2 = vld [vmem:[%s1831_s2 + $0x28] sm:$0xff]  }
 0x3f9   : > { %v728_v21 = vrot.slane %v727_v49, 4  ;;  %v675_v51 = vpop.permute.xlu0 %674  ;;  %v718_v52 = vrot.slane %v717_v14, 1  ;;  %v723_v55 = vrot.slane %v722_v15, 2  ;;  %v744_v5 = vpack.c.bf16 %v712_v50, %v712_v50  ;;  %1263 = vmatpush3.bf16.msra.mxu0 %v1335_v2 }
 0x3fa   : > { %v684_v31 = vmul.f32 %v1579_v39, %v675_v51  ;;  %v770_v23 = vsel %vm423_vm2, %v763_v12, %v769_v20  ;;  %v1460_v50 = vmov 33   ;;  %1264 = vmatprep.subr.bf16.mxu0 %v1456_v59  ;;  %v1212_v20 = vld [vmem:[%s1832_s3 + $0x4] ss:$0 sm:$0xff] }
 0x3fb   : > { %v729_v56 = vadd.f32 %v728_v21, %v727_v49  ;;  %v724_v57 = vadd.f32 %v723_v55, %v722_v15  ;;  %v719_v61 = vadd.f32 %v718_v52, %v717_v14  ;;  %v764_v32 = vunpack.c.l.b16 %v744_v5  ;;  %1323 = vset.pattern.permute.xlu1 %v1460_v50  ;;  %v1336_v5 = vld [vmem:[%s1831_s2 + $0x20] sm:$0xff]  }
 0x3fc   : > { %v734_v35 = vsel %vm257_vm0, %v684_v31, 0.0 }
 0x3fd   : > { %v730_v44 = vrot.slane %v729_v56, 2  ;;  %v735_v60 = vrot.slane %v734_v35, 4  ;;  %v725_v62 = vrot.slane %v724_v57, 1  ;;  %v745_v7 = vpack.c.bf16 %v719_v61, %v719_v61  ;;  %1265 = vmatpush3.bf16.msra.mxu0 %v1336_v5 }
 0x3fe   : > { %v771_v27 = vsel %vm425_vm3, %v764_v32, %v770_v23 }
 0x3ff   : > { %v731_v0 = vadd.f32 %v730_v44, %v729_v56  ;;  %v736_v1 = vadd.f32 %v735_v60, %v734_v35  ;;  %v726_v3 = vadd.f32 %v725_v62, %v724_v57  ;;  %v765_v19 = vunpack.c.l.b16 %v745_v7 }
 0x400   : > { %v1461_v44 = vmov 32  }
 0x401   : > { %v732_v39 = vrot.slane %v731_v0, 1  ;;  %v737_v6 = vrot.slane %v736_v1, 2  ;;  %v746_v9 = vpack.c.bf16 %v726_v3, %v726_v3  ;;  %v772_v30 = vsel %vm427_vm4, %v765_v19, %v771_v27  ;;  %1322 = vset.pattern.permute.xlu0 %v1461_v44  ;;  %v1214_v27 = vld [vmem:[%s1832_s3 + $0x8] ss:$0 sm:$0xff] }
 0x403   : > { %v733_v10 = vadd.f32 %v732_v39, %v731_v0  ;;  %v738_v11 = vadd.f32 %v737_v6, %v736_v1  ;;  %v766_v22 = vunpack.c.l.b16 %v746_v9  ;;  %v1207_v0 = vld [vmem:[%s1832_s3 + $0xb] ss:$0 sm:$0xff]  ;;  %v1206_v1 = vld [vmem:[%s1832_s3 + $0xa] ss:$0 sm:$0xff] }
 0x405   : > { %v747_v17 = vpack.c.bf16 %v733_v10, %v733_v10  ;;  %v739_v18 = vrot.slane %v738_v11, 1  ;;  %v773_v33 = vsel %vm429_vm5, %v766_v22, %v772_v30 }
 0x407   : > { %v740_v24 = vadd.f32 %v739_v18, %v738_v11  ;;  %v767_v25 = vunpack.c.l.b16 %v747_v17  ;;  %v208_v18 = vld [vmem:[%s1832_s3 + $0x9] sm:$0x1] }
 0x408   : > { %1270 = vpush %v208_v18 }
 0x409   : > { %v748_v28 = vpack.c.bf16 %v740_v24, %v740_v24  ;;  %v774_v34 = vsel %vm431_vm6, %v767_v25, %v773_v33  ;;  %v1213_v33 = vld [vmem:[%s1832_s3 + $0x7] ss:$0 sm:$0xff] }
 0x40b   : > { %v768_v29 = vunpack.c.l.b16 %v748_v28 }
 0x40d   : > { %v775_v36 = vsel %vm433_vm7, %v768_v29, %v774_v34 }
 0x40e   : > { %v776_v41 = vpack.c.b16 %v775_v36, %v775_v36 }
 0x410   : > { %1251 = vmatmul.mubr.msk.bf16.vlgmr.msra.gmra.mxu1 %vm257_vm0, %v776_v41 }
 0x411   : > { %1255 = vmatpush3.bf16.msra.mxu1 %v1333_v40  ;;  %1258 = vmatprep.mubr.msk.bf16.mxu1 %vm1457_vm9, %v1456_v59 }
 0x412   : > { %1256 = vmatprep.subr.bf16.mxu1 %v1456_v59 }
 0x415   : > { %1257 = vmatpush3.bf16.msra.mxu1 %v1334_v43 }
 0x439   : > { %s1271_s27 = spop %1270 }
 0x46a   : > { %v904_v16 = vpop.permute.xlu1 %903 }
 0x4d0   : > { %v826_v46 = vpop.f32.mrf.mxu1 }
 0x4d1   : > { %v836_v47 = vadd.f32 %v1200_v37, %v826_v46 }
 0x4d2   : > { %v1252_v13 = vpop.f32.mrf.mxu1 }
 0x4d3   : > { %v837_v14 = vmax.f32 %v836_v47, 0.0 }
 0x4d4   : > { %v829_v48 = vpop.f32.mrf.mxu1 }
 0x4d5   : > { %v838_v15 = vpack.c.bf16 %v837_v14, %v837_v14 }
 0x4d6   : > { %v1253_v49 = vpop.f32.mrf.mxu1 }
 0x4d7   : > { %1259 = vmatmul.mubr.msk.bf16.vlgmr.msra.gmra.mxu1 %vm257_vm0, %v838_v15 }
 0x597   : > { %v1738_v42 = vpop.f32.mrf.mxu1 }
 0x598   : > { %v906_v21 = vadd.f32 %v904_v16, %v1738_v42 }
 0x599   : > { %v1260_v51 = vpop.f32.mrf.mxu1 }
 0x59a   : > { %v908_v52 = vsel %vm907_vm10, %v906_v21, -inf }
 0x59b   : > { %v895_v55 = vpop.f32.mrf.mxu1  ;;  %909 = vmax.xlane.f32.xlu0 %v908_v52  ;;  %v1089_v52 = vstv %s1271_s27 }
 0x59d   : > { %v1261_v31 = vpop.f32.mrf.mxu1 }
 0x624   : > { %v910_v54 = vpop.xlane.xlu0 %909 }
 0x625   : > { %v911_v56 = vsub.f32 %v906_v21, %v910_v54 }
 0x627   : > { %v912_v38 = vmul.f32 1.442695, %v911_v56 }
 0x629   : > { %1385 = vpow2.f32 %v912_v38 }
 0x636   : > { %v1386_v57 = vpop.eup %1385 }
 0x637   : > { %915 = vrot.lane.b32.xlu1 %v1386_v57, %s1459_s10 }
 0x6a9   : > { %v916_v35 = vpop.permute.xlu1 %915 }
 0x6aa   : > { %v919_v58 = vsel %vm918_vm11, %v916_v35, 0.0 }
 0x6ab   : > { %920 = vadd.xlane.f32.xlu1 %v919_v58 }
 0x734   : > { %v921_v60 = vpop.xlane.xlu1 %920 }
 0x735   : > { %1387 = vrcp.f32 %v921_v60 }
 0x742   : > { %v1388_v61 = vpop.eup %1387 }
 0x743   : > { %v923_v62 = vmul.f32 %v1388_v61, %v1386_v57 }
 0x745   : > { %951 = vperm.xlu1 %1323, %v923_v62   ;;  %936 = vperm.xlu0 %1322, %v923_v62  }
 0x749   : > { %929 = vrot.lane.b32.xlu1 %v1205_v63, %s1458_s7  ;;  %1324 = vset.pattern.permute.xlu0 %v1460_v50 }
 0x7c0   : > { %v952_v3 = vpop.permute.xlu1 %951  ;;  %v937_v4 = vpop.permute.xlu0 %936 }
 0x7c1   : > { %v958_v39 = vmul.f32 %v1207_v0, %v952_v3  ;;  %v943_v6 = vmul.f32 %v1206_v1, %v937_v4 }
 0x7c3   : > { %960 = vrot.lane.b32.xlu1 %v958_v39, %s1458_s7  ;;  %945 = vrot.lane.b32.xlu0 %v943_v6, %s1458_s7 }
 0x7c4   : > { %v930_v7 = vpop.permute.xlu1 %929 }
 0x7c5   : > { %v932_v9 = vadd.f32 %v930_v7, %v826_v46 }
 0x7c7   : > { %1033 = vrot.lane.b32.xlu1 %v1211_v8, %s1458_s7  ;;  %s1393_s7 = scalar_lea.vmem %s1120_s30, 128 }
 0x7c8   : > { %p1394_p11 = scmp.ne.s32.totalorder %s1120_s30, %s1393_s7 }
 0x7ca   : > { %p1395_p12 = pnand %p1394_p11, %p1528_p5 }
 0x7cc   : > { %p1396_p13 = pneg %p1395_p12 }
 0x835   : > { %v946_v10 = vpop.permute.xlu0 %945  ;;  %v961_v12 = vpop.permute.xlu1 %960 }
 0x836   : > { %v948_v11 = vadd.f32 %v946_v10, %v932_v9 }
 0x838   : > { %v963_v26 = vadd.f32 %v961_v12, %v948_v11 }
 0x839   : > { %v1034_v19 = vpop.permute.xlu1 %1033 }
 0x83a   : > { %v964_v32 = vmax.f32 %v963_v26, 0.0 }
 0x83c   : > { %v965_v17 = vpack.c.bf16 %v964_v32, %v964_v32 }
 0x83e   : > { %971 = vrot.lane.b32.xlu0 %v965_v17, %s1459_s10 }
 0x8b0   : > { %v972_v59 = vpop.permute.xlu0 %971 }
 0x8b1   : > { %1267 = vmatmul.mubr.msk.bf16.vlgmr.msra.gmra.mxu0 %vm257_vm0, %v972_v59 }
 0x971   : > { %v1022_v22 = vpop.f32.mrf.mxu0 }
 0x972   : > { %v1036_v24 = vadd.f32 %v1034_v19, %v1022_v22  ;;  %v1052_v23 = vadd.f32 %v1022_v22, %v1738_v42 }
 0x973   : > { %v1268_v25 = vpop.f32.mrf.mxu0 }
 0x974   : > { %v1057_v28 = vadd.f32 %v1212_v20, %v1052_v23  ;;  %v1037_v30 = vsel %vm907_vm10, %v1036_v24, -inf }
 0x975   : > { %1038 = vmax.xlane.f32.xlu0 %v1037_v30  ;;  %v1025_v29 = vpop.f32.mrf.mxu0 }
 0x976   : > { %v1070_v34 = vmul.f32 %v1214_v27, %v1057_v28  ;;  %v1062_v41 = vmul.f32 %v1213_v33, %v1057_v28 }
 0x977   : > { %v1269_v36 = vpop.f32.mrf.mxu0 }
 0x978   : > { %v1071_v40 = vsel %vm257_vm0, %v1070_v34, 0.0  ;;  %v1063_v43 = vsel %vm257_vm0, %v1062_v41, 0.0 }
 0x979   : > { %1072 = vadd.xlane.f32.xlu0 %v1071_v40 }
 0x97d   : > { %1064 = vadd.xlane.f32.xlu0 %v1063_v43 }
 0x993   : > { %1092 = vrot.lane.b32.xlu0 %v923_v62, %s1462_s20 }
 0x9fe   : > { %v1039_v45 = vpop.xlane.xlu0 %1038 }
 0x9ff   : > { %v1040_v37 = vsub.f32 %v1036_v24, %v1039_v45 }
 0xa01   : > { %v1041_v46 = vmul.f32 1.442695, %v1040_v37 }
 0xa02   : > { %v1073_v16 = vpop.xlane.xlu0 %1072 }
 0xa03   : > { %1389 = vpow2.f32 %v1041_v46  ;;  %v1078_v21 = vrot.slane %v1073_v16, %v1593_v53 }
 0xa06   : > { %v1065_v42 = vpop.xlane.xlu0 %1064 }
 0xa07   : > { %v1086_v51 = vadd.f32 %v1078_v21, %v1065_v42 }
 0xa09   : > { %v1091_v55 = vadd.f32 %v1089_v52, %v1086_v51 }
 0xa0a   : > { %v1093_v31 = vpop.permute.xlu0 %1092 }
 0xa0b   : > { %v1099_v54 = vsel %vm436_vm8, %v1091_v55, %v1093_v31 }
 0xa10   : > { %v1390_v47 = vpop.eup %1389 }
 0xa11   : > { %1044 = vrot.lane.b32.xlu1 %v1390_v47, %s1459_s10  ;;  %s1216_s10 = sshll.u32 %s1511_s19, 7  ;;  %s1464_s19 = smov [#allocation2]  }
 0xa12   : > { %s1794_s8 = scalar_lea.hbm %s1833_s4, %s1216_s10  ;;  %s1397_s11 = sshll.u32 %s1464_s19, 4  ;;  %s1398_s11 = int_to_ptr.vmem [resolvable:$false] %s1397_s11 }
 0xa13   : > { %s1399_s12 = scalar_lea.vmem %s1398_s11, 256  ;;  %p1400_p0 = scmp.lt.s32.totalorder %s1120_s30, %s1398_s11 }
 0xa14   : > { %p1401_p1 = scmp.lt.s32.totalorder %s1399_s12, %s1393_s7 }
 0xa16   : > { %p1402_p2 = por %p1401_p1, %p1400_p0 }
 0xa18   : > { %p1403_p3 = pnand %p1402_p2, %p1396_p13 }
 0xa83   : > { %v1045_v13 = vpop.permute.xlu1 %1044 }
 0xa84   : > { %v1047_v14 = vsel %vm918_vm11, %v1045_v13, 0.0 }
 0xa85   : > { %1048 = vadd.xlane.f32.xlu1 %v1047_v14 }
 0xb0e   : > { %v1049_v48 = vpop.xlane.xlu1 %1048 }
 0xb0f   : > { %1391 = vrcp.f32 %v1049_v48 }
 0xb1c   : > { %v1392_v15 = vpop.eup %1391 }
 0xb1d   : > { %v1051_v49 = vmul.f32 %v1392_v15, %v1390_v47 }
 0xb1f   : > { %1096 = vrot.lane.b32.xlu1 %v1051_v49, %s1463_s22 }
 0xb91   : > { %v1097_v56 = vpop.permute.xlu1 %1096 }
 0xb92   : > { %v1101_v38 = vsel %vm1100_vm12, %v1099_v54, %v1097_v56 }
 0xb93   : > { %v1103_v53 = vsel %vm1102_vm13, %v1101_v38, 0.0 }
 0xb94   : > { %1104 = vst [vmem:[%s191_s29] sm:$0xff] %v1103_v53 }
 0xb95   : > { %1406 = shalt.err (!%p1403_p3)
}
 0xb96   : > { %s1407_s13 = scalar_lea.hbm %s1794_s8, 128  ;;  %s1411_s22 = scalar_lea.hbm %s1833_s4, 256 }
 0xb97   : > { %p1408_p4 = scmp.ne.s32.totalorder %s1794_s8, %s1407_s13  ;;  %p1412_p9 = scmp.lt.s32.totalorder %s1794_s8, %s1833_s4 }
 0xb98   : > { %p1413_p10 = scmp.lt.s32.totalorder %s1411_s22, %s1407_s13 }
 0xb99   : > { %p1409_p7 = pnand %p1408_p4, %p1528_p5 }
 0xb9a   : > { %p1414_p11 = por %p1413_p10, %p1412_p9 }
 0xb9b   : > { %p1410_p8 = pneg %p1409_p7 }
 0xb9d   : > { %p1415_p12 = pnand %p1414_p11, %p1410_p8 }
 0xb9f   : > { %1418 = shalt.err (!%p1415_p12)
}
 0xba0   : > { %1272 = dma.vmem_to_hbm [thread:$0]  (%p1528_p5), %s1120_s30, 128, %s1794_s8, %s1106_s9  }
 0xba1 PF: > { %p1278_p13 = scmp.ge.s32.totalorder %s1453_s18, 2  ;;  %s1131_s28 = sand.u32 1, %s1441_s15  }
 0xba2   : > { %s1132_s10 = scalar_lea.sflag [#allocation3], %s1131_s28 }
 0xba3   : > { %p1275_p0 = pnand %p1278_p13, %p1532_p6 }
 0xba5   : > { %p1276_p1 = pneg %p1275_p0 }
 0xba7   : > { %1436 = dma.done.wait (%p1276_p1), %s1132_s10, 128  }
 0xba8   : > { %1438 = vsyncadd (%p1276_p1), %s1132_s10, 4294967168  ;;  %p14_p2 = scmp.ge.s32.totalorder %s1515_s21, 4   ;;  %s1836_s15 = smov %s1445_s16 }
 0xba9   : > { %s1837_s16 = smov %s1449_s17  ;;  %s1838_s17 = smov %s1526_s24 }
 0xbaa   : > { %s1839_s18 = smov %s1515_s21  ;;  %16 = sbr.rel (!%p14_p2) target bundleno = 3 (0x3), region = 71 }
 0xbaf   :  { %1137 = vsyncpa [#allocation3], 1 }
 0xbb0   :  { %1139 = vsyncpa [#allocation3 + $0x1], 1 }

</bundles_post_ra>
